<compile_context>
chip_gen: v6e
topology: v6e:2x2x1
jax: 0.10.0
libtpu: 0.0.40
codegen_flags: <defaults>
</compile_context>

<pallas_src>
import functools

import jax
import jax.numpy as jnp
from jax.experimental import pallas as pl
from jax.experimental.pallas import tpu as pltpu


def _h_swish_kernel(x_ref, o_ref):
    x = x_ref[...].astype(jnp.float32)
    # h_sigmoid(x) = relu6(x + 3) / 6 ; h_swish(x) = x * h_sigmoid(x)
    h_sig = jnp.clip(x + 3.0, 0.0, 6.0) * (1.0 / 6.0)
    o_ref[...] = (x * h_sig).astype(o_ref.dtype)


# Below this many bytes, a pallas_call's fixed dispatch + pipeline prologue
# dominates and blocks fusion — use the plain jnp expression instead.
_SMALL_CUTOFF_BYTES = 512 * 1024


@functools.lru_cache(maxsize=1)
def _block_plan():
    """(target_block_bytes, vmem_limit_bytes or None) for the local TPU gen."""
    try:
        info = pltpu.get_tpu_info()
        vmem_cap = int(info.vmem_capacity_bytes)
    except Exception:
        # Unknown hardware / interpret mode: conservative defaults.
        return 2 * 1024 * 1024, None
    if vmem_cap <= 80 * 1024 * 1024:
        # v7x-class: 64 MiB VMEM, ~3.2 TB/s HBM.  Big blocks so the ~0.35 us
        # per-grid-step overhead is <7% of step time; raise the scoped limit
        # since 8 MiB x (in+out) x 2 buffers = 32 MiB hits the default exactly.
        return 8 * 1024 * 1024, 44 * 1024 * 1024
    # v5e / v6e class: 128 MiB VMEM.  4 MiB blocks (16 MiB double-buffered);
    # explicit 32 MiB limit keeps this legal on v5e's 16 MiB scoped default.
    return 4 * 1024 * 1024, 32 * 1024 * 1024


def _h_swish_jnp(x):
    return (x * (jnp.clip(x + 3.0, 0.0, 6.0) * (1.0 / 6.0))).astype(x.dtype)


def _pick_cols(n):
    """Widest lane-dense column count (multiple of 128) that divides n."""
    for cand in (16384, 8192, 4096, 2048, 1024, 512, 256, 128):
        if n % cand == 0:
            return cand
    return None


def _h_swish_2d(x2d: jax.Array, donate: bool = False) -> jax.Array:
    """Run the kernel on a lane-dense (rows, cols) slab; cols % 128 == 0."""
    rows, cols = x2d.shape
    itemsize = jnp.dtype(x2d.dtype).itemsize
    # Sublane multiple for the second-to-last dim (8 for f32, 16 for bf16, ...).
    sublane_mult = 8 * max(1, 4 // itemsize)

    target_block_bytes, vmem_limit_bytes = _block_plan()
    max_block_rows = max(1, target_block_bytes // (cols * itemsize))

    if max_block_rows >= rows:
        if rows >= 2 * sublane_mult:
            # Whole slab fits in one block, but a grid of (1,) pins everything
            # to a single TensorCore on megacore chips — split into >= 2 blocks.
            half = pl.cdiv(rows, 2)
            block_rows = pl.cdiv(half, sublane_mult) * sublane_mult
        else:
            block_rows = rows  # full-dim block is always a legal block shape
    else:
        block_rows = max(sublane_mult,
                         (max_block_rows // sublane_mult) * sublane_mult)

    grid = (pl.cdiv(rows, block_rows),)  # partial last block handled by Pallas

    compiler_kwargs = {"dimension_semantics": ("parallel",)}
    if vmem_limit_bytes is not None:
        compiler_kwargs["vmem_limit_bytes"] = vmem_limit_bytes

    extra_kwargs = {}
    if donate:
        extra_kwargs["input_output_aliases"] = {0: 0}

    return pl.pallas_call(
        _h_swish_kernel,
        out_shape=jax.ShapeDtypeStruct((rows, cols), x2d.dtype),
        grid_spec=pltpu.PrefetchScalarGridSpec(
            num_scalar_prefetch=0,
            grid=grid,
            in_specs=[pl.BlockSpec((block_rows, cols), lambda i: (i, 0))],
            out_specs=pl.BlockSpec((block_rows, cols), lambda i: (i, 0)),
        ),
        compiler_params=pltpu.CompilerParams(**compiler_kwargs),
        **extra_kwargs,
    )(x2d)


def h_swish(x: jax.Array, donate: bool = False,
            force_pallas: bool = False) -> jax.Array:
    """Elementwise h_swish matching the PyTorch module. Accepts any shape."""
    orig_shape = x.shape
    n = x.size
    if n == 0:
        return x
    itemsize = jnp.dtype(x.dtype).itemsize

    # Tiny activations: plain jnp is strictly faster (and fusable with
    # neighboring XLA ops); skip the pallas_call dispatch entirely.
    if not force_pallas and n * itemsize < _SMALL_CUTOFF_BYTES:
        return _h_swish_jnp(x)

    x_flat = x.reshape(-1)
    cols = _pick_cols(n)

    if cols is None:
        # n not divisible by 128: run the fast 2D path on the 128-aligned
        # prefix and compute the <128-element tail with jnp, then stitch.
        n_main = n - (n % 128)
        if n_main > 0:
            main_cols = _pick_cols(n_main)
            main = _h_swish_2d(
                x_flat[:n_main].reshape(n_main // main_cols, main_cols)
            ).reshape(-1)
            tail = _h_swish_jnp(x_flat[n_main:])
            out = jnp.concatenate([main, tail])
        else:
            out = _h_swish_jnp(x_flat)
        return out.reshape(orig_shape)

    out2d = _h_swish_2d(x_flat.reshape(n // cols, cols), donate=donate)
    return out2d.reshape(orig_shape)


def _h_swish_ref(x):
    return x * (jnp.clip(x + 3.0, 0.0, 6.0) / 6.0)


if __name__ == "__main__":
    key = jax.random.PRNGKey(0)
    # NCHW, small shapes consistent with a conv feature map.
    x = jax.random.normal(key, (2, 4, 16, 16), dtype=jnp.float32) * 4.0
    ref = _h_swish_ref(x)

    # Default path (this size goes through the small-array jnp cutoff).
    out = jax.block_until_ready(h_swish(x))
    assert out.shape == x.shape and out.dtype == x.dtype
    assert jnp.allclose(out, ref, atol=1e-6, rtol=1e-6), "mismatch (jnp path)"

    # Force the Pallas kernel path to verify it compiles and runs on TPU.
    out_pallas = jax.block_until_ready(h_swish(x, force_pallas=True))
    assert out_pallas.shape == x.shape and out_pallas.dtype == x.dtype
    assert jnp.allclose(out_pallas, ref, atol=1e-6,
                        rtol=1e-6), "mismatch (pallas path)"

    print("KERNEL_OK")
</pallas_src>

<mosaic_0001>
module attributes {stable_mosaic.version = 11 : i64} {
  func.func @_h_swish_kernel(%arg0: i32, %arg1: memref<1x2048xf32, #tpu.memory_space<vmem>>, %arg2: memref<1x2048xf32, #tpu.memory_space<vmem>>) attributes {dimension_semantics = [#tpu.dimension_semantics<parallel>], iteration_bounds = array<i64: 1>, scalar_prefetch = 0 : i64, scratch_operands = 0 : i64, tpu.core_type = #tpu.core_type<tc>, window_params = [{transform_indices = @transform_0, window_bounds = array<i64: 1, 2048>}, {transform_indices = @transform_1, window_bounds = array<i64: 1, 2048>}]} {
    %c0 = arith.constant 0 : index
    %c0_0 = arith.constant 0 : index
    %0 = vector.load %arg1[%c0, %c0_0] : memref<1x2048xf32, #tpu.memory_space<vmem>>, vector<1x2048xf32>
    %cst = arith.constant 3.000000e+00 : f32
    %1 = vector.broadcast %cst : f32 to vector<1x2048xf32>
    %2 = arith.addf %0, %1 : vector<1x2048xf32>
    %cst_1 = arith.constant 0.000000e+00 : f32
    %cst_2 = arith.constant 6.000000e+00 : f32
    %3 = vector.broadcast %cst_1 : f32 to vector<1x2048xf32>
    %4 = arith.maximumf %3, %2 : vector<1x2048xf32>
    %5 = vector.broadcast %cst_2 : f32 to vector<1x2048xf32>
    %6 = arith.minimumf %5, %4 : vector<1x2048xf32>
    %cst_3 = arith.constant 0.166666672 : f32
    %7 = vector.broadcast %cst_3 : f32 to vector<1x2048xf32>
    %8 = arith.mulf %6, %7 : vector<1x2048xf32>
    %9 = arith.mulf %0, %8 : vector<1x2048xf32>
    %c0_4 = arith.constant 0 : index
    %c0_5 = arith.constant 0 : index
    %10 = vector.load %arg2[%c0_4, %c0_5] : memref<1x2048xf32, #tpu.memory_space<vmem>>, vector<1x2048xf32>
    tpu.vector_store %arg2[%c0_4, %c0_5], %9 {strides = array<i32>} : memref<1x2048xf32, #tpu.memory_space<vmem>>, vector<1x2048xf32>,
    return
  }
  func.func @transform_0(%arg0: i32) -> (i32, i32) {
    %c0_i32 = arith.constant 0 : i32
    %c0_i32_0 = arith.constant 0 : i32
    return %arg0, %c0_i32 : i32, i32
  }
  func.func @transform_1(%arg0: i32) -> (i32, i32) {
    %c0_i32 = arith.constant 0 : i32
    %c0_i32_0 = arith.constant 0 : i32
    return %arg0, %c0_i32 : i32, i32
  }
}

</mosaic_0001>

<bundles_post_ra>
// kernel: tpu_custom_call.1
= control target key start
LH: loop header
LB: loop body
LE: loop exit
PB: predicated region body
PF: predicated region fallthrough
CT: control target
= control target key end

     0   :  { %6 = vsyncpa [#allocation3], 0  ;;  %s114_s0 = inlined_call_operand.hbm [shape: f32[1,2048], index: 0, kind: input, shape index: {}]   ;;  %s115_s1 = inlined_call_operand.hbm [shape: f32[1,2048], index: 1, kind: output, shape index: {}]  }
   0x1   :  { %7 = vsyncpa [#allocation4], 0  ;;  %s96_s6 = smov [#allocation2]  }
   0x2   :  { %s14_s7 = sshll.u32 %s96_s6, 4  ;;  %s15_s7 = int_to_ptr.vmem [resolvable:$true] %s14_s7 }
   0x3   :  { %s60_s8 = scalar_lea.vmem %s15_s7, 256  ;;  %p65_p1 = scmp.lt.s32.totalorder %s15_s7, %s15_s7 }
   0x4   :  { %p61_p0 = scmp.ne.s32.totalorder %s15_s7, %s60_s8  ;;  %p66_p2 = scmp.lt.s32.totalorder %s60_s8, %s60_s8 }
   0x6   :  { %p67_p3 = por %p66_p2, %p65_p1 }
   0x8   :  { %p68_p4 = pnand %p67_p3, %p61_p0 }
   0xa   :  { %71 = shalt.err (!%p68_p4)
}
   0xb   :  { %17 = dma.hbm_to_vmem [thread:$0]  %s114_s0, 256, %s15_s7, [#allocation3]  }
   0xc   :  { %92 = dma.done.wait [#allocation3], 256  }
   0xd   :  { %93 = vsyncadd [#allocation3], 4294967040  ;;  %v21_v0 = vld [vmem:[#allocation2] sm:$0xff]  ;;  %v22_v1 = vld [vmem:[#allocation2 + $0x8] sm:$0xff]  ;;  %s97_s11 = smov [#allocation5]  }
   0xe   :  { %v23_v2 = vadd.f32 3.0, %v21_v0  ;;  %v24_v3 = vadd.f32 3.0, %v22_v1  ;;  %s41_s12 = sshll.u32 %s97_s11, 4  ;;  %s42_s12 = int_to_ptr.vmem [resolvable:$true] %s41_s12 }
   0xf   :  { %s72_s0 = scalar_lea.vmem %s42_s12, 256  ;;  %p77_p6 = scmp.lt.s32.totalorder %s42_s12, %s42_s12 }
  0x10   :  { %v25_v4 = vmax.f32 %v23_v2, 0.0  ;;  %v26_v5 = vmax.f32 %v24_v3, 0.0  ;;  %p73_p5 = scmp.ne.s32.totalorder %s42_s12, %s72_s0  ;;  %p78_p7 = scmp.lt.s32.totalorder %s72_s0, %s72_s0 }
  0x12   :  { %v27_v6 = vmin.f32 %v25_v4, 6.0  ;;  %v28_v7 = vmin.f32 %v26_v5, 6.0  ;;  %p79_p8 = por %p78_p7, %p77_p6 }
  0x14   :  { %v29_v8 = vmul.f32 0.16666667, %v27_v6  ;;  %v30_v9 = vmul.f32 0.16666667, %v28_v7  ;;  %p80_p9 = pnand %p79_p8, %p73_p5 }
  0x16   :  { %v31_v10 = vmul.f32 %v29_v8, %v21_v0  ;;  %v32_v11 = vmul.f32 %v30_v9, %v22_v1 }
  0x18   :  { %33 = vst [vmem:[#allocation5] sm:$0xff] %v31_v10  ;;  %34 = vst [vmem:[#allocation5 + $0x8] sm:$0xff] %v32_v11 }
  0x19   :  { %83 = shalt.err (!%p80_p9)
}
  0x1a   :  { %44 = dma.vmem_to_hbm [thread:$0]  %s42_s12, 256, %s115_s1, [#allocation4]  }
  0x1b   :  { %94 = dma.done.wait [#allocation4], 256  }
  0x1c   :  { %95 = vsyncadd [#allocation4], 4294967040 }
  0x1d   :  { %48 = vsyncpa [#allocation3], 1 }
  0x1e   :  { %49 = vsyncpa [#allocation4], 1 }

</bundles_post_ra>
